<compile_context>
chip_gen: v7x
topology: tpu7x:2x2x1
jax: 0.10.0
libtpu: 0.0.40
codegen_flags: <defaults>
</compile_context>

<pallas_src>
import functools
import math

import jax
import jax.numpy as jnp
from jax import lax
from jax.experimental import pallas as pl
from jax.experimental.pallas import tpu as pltpu

# Layer widths of the ConsciousnessNetwork.
DIMS = [42, 137, 89, 55, 34, 21, 13, 8, 5, 3]
N_LAYERS = len(DIMS) - 1          # 9 Linear layers
P = 256                           # padded width for layer-0 output (137 > 128)
H = 128                           # narrow width carried after layer 1 (<= 89 real)
IN_PAD = 48                       # layer-0 contraction rows, 8-sublane aligned


def _round_up(v, m):
    return ((v + m - 1) // m) * m


def _gelu_exact(x, *, bf16=False):
    """PyTorch nn.GELU() default (approximate='none'): 0.5*x*(1+erf(x/sqrt(2))).

    bf16=True evaluates the erf polynomial in bf16 (v6e/v7x VALU packs 2x per
    vreg op).  Off by default: must be numerics-verified and is a loss on v5e.
    """
    if bf16:
        xb = x.astype(jnp.bfloat16)
        c = jnp.asarray(1.0 / math.sqrt(2.0), jnp.bfloat16)
        y = jnp.asarray(0.5, jnp.bfloat16) * xb * (
            jnp.asarray(1.0, jnp.bfloat16) + lax.erf(xb * c))
        return y.astype(jnp.float32)
    return 0.5 * x * (1.0 + lax.erf(x * (1.0 / math.sqrt(2.0))))


def _mlp_kernel(x_ref, w_ref, b_ref, o_ref, *, gelu_bf16=False):
    """x_ref: (bt, 48) f32 | w_ref: (9*P, P) bf16 | b_ref: (9, P) f32
    o_ref: (bt, 128) f32 (padded lanes written as exact zeros)."""
    # ----- layer 0: (bt, 48) @ (48, 256) -> (bt, 256).  Rows 42..47 of the
    # slab and cols 42..47 of x are zero, so the 8-aligned slice is exact. -----
    h = x_ref[...]
    w0 = w_ref[0:IN_PAD, :]                            # aligned static slice, bf16
    h = jnp.dot(h.astype(jnp.bfloat16), w0,
                preferred_element_type=jnp.float32)
    h = h + b_ref[0:1, :]
    h = _gelu_exact(h, bf16=gelu_bf16)

    # ----- layer 1: (bt, 256) @ (256, 128) -> (bt, 128).  Real out width is
    # 89 <= 128, dropped cols are zero.  From here on everything is 128-lane. -----
    w1 = w_ref[P:2 * P, :H]
    h = jnp.dot(h.astype(jnp.bfloat16), w1,
                preferred_element_type=jnp.float32)
    h = h + b_ref[1:2, :H]
    h = _gelu_exact(h, bf16=gelu_bf16)

    # ----- layers 2..8: (bt, 128) @ (128, 128).  Real widths <= 89, so the
    # dropped slab rows/cols are zero and the 128-slices are exact + aligned. -----
    for l in range(2, N_LAYERS):
        w = w_ref[l * P:l * P + H, :H]                 # aligned static slice
        h = jnp.dot(h.astype(jnp.bfloat16), w,
                    preferred_element_type=jnp.float32)
        h = h + b_ref[l:l + 1, :H]
        if l < N_LAYERS - 1:
            h = _gelu_exact(h, bf16=gelu_bf16)

    # ----- softmax over the 3 real output columns on (bt, 128).  Padded
    # lanes of h are exactly 0 (zero weight cols + zero bias); mask instead of
    # slicing so the vector work stays lane-dense.  Per-row reciprocal instead
    # of a full-width divide (EUP path, off the saturated VALU slot). -----
    col = lax.broadcasted_iota(jnp.int32, h.shape, 1)
    valid = col < DIMS[-1]
    m = jnp.max(jnp.where(valid, h, -jnp.inf), axis=-1, keepdims=True)
    e = jnp.where(valid, jnp.exp(h - m), 0.0)
    s = jnp.sum(e, axis=-1, keepdims=True)
    inv = pl.reciprocal(s, approx=False)
    probs = e * inv                                    # padded lanes stay exact 0
    o_ref[...] = probs                                 # full-lane dense store


def pack_params(weights_t, biases):
    """weights_t[l]: (in_l, out_l) f32, biases[l]: (out_l,) f32 ->
    (w_slab bf16 (9*P, P), b_slab f32 (9, P)), zero padded per layer."""
    w_blocks = []
    b_slab = jnp.zeros((N_LAYERS, P), jnp.float32)
    for l, (w, b) in enumerate(zip(weights_t, biases)):
        blk = jnp.zeros((P, P), jnp.float32)
        blk = blk.at[: w.shape[0], : w.shape[1]].set(w)
        w_blocks.append(blk)
        b_slab = b_slab.at[l, : b.shape[-1]].set(b.reshape(-1))
    w_slab = jnp.concatenate(w_blocks, axis=0).astype(jnp.bfloat16)
    return w_slab, b_slab


def _pick_batch_tile(batch, max_tile=1024):
    """Large tiles amortize the ~0.35us/step pipeline overhead and fill the
    MXU.  For B >= 512 target >= 4 grid steps so each of v7x's 2 TensorCores
    gets >= 2 steps (keeps per-core DMA/compute overlap); costless on the
    single-TC v5e/v6e.  VMEM use stays at a few MB at 1024 rows."""
    bp = _round_up(batch, 8)
    if batch >= 512:
        return min(max_tile, _round_up(pl.cdiv(bp, 4), 8))
    return min(max_tile, bp)


def consciousness_forward(x, w_slab, b_slab, *, batch_tile=None,
                          gelu_bf16=False):
    """x: (B, 42) f32; w_slab/b_slab from pack_params. Returns (B, 3) f32."""
    B, in_dim = x.shape
    assert in_dim == DIMS[0]
    bt = _pick_batch_tile(B) if batch_tile is None else _round_up(batch_tile, 8)

    b_pad = _round_up(B, bt)
    # Ragged tail rows -> zero; input cols 42..47 -> zero (match the 8-aligned
    # layer-0 weight slice, whose rows 42..47 are zero so the math is exact).
    x = jnp.pad(x, ((0, b_pad - B), (0, IN_PAD - in_dim)))
    grid = (b_pad // bt,)

    kernel = functools.partial(_mlp_kernel, gelu_bf16=gelu_bf16)

    out = pl.pallas_call(
        kernel,
        out_shape=jax.ShapeDtypeStruct((b_pad, H), jnp.float32),
        grid=grid,
        in_specs=[
            pl.BlockSpec((bt, IN_PAD), lambda i: (i, 0)),
            pl.BlockSpec(w_slab.shape, lambda i: (0, 0)),   # resident weights
            pl.BlockSpec(b_slab.shape, lambda i: (0, 0)),   # resident biases
        ],
        out_specs=pl.BlockSpec((bt, H), lambda i: (i, 0)),  # lane-dense output
        compiler_params=pltpu.CompilerParams(
            dimension_semantics=("parallel",)),
    )(x, w_slab, b_slab)

    return out[:B, :DIMS[-1]]


def init_params(key):
    """PyTorch Linear default init: W, b ~ U(-1/sqrt(fan_in), 1/sqrt(fan_in)).
    Weights stored transposed as (in, out); biases as (out,)."""
    weights_t, biases = [], []
    for li in range(N_LAYERS):
        fan_in, fan_out = DIMS[li], DIMS[li + 1]
        key, kw, kb = jax.random.split(key, 3)
        bound = 1.0 / math.sqrt(fan_in)
        weights_t.append(jax.random.uniform(
            kw, (fan_in, fan_out), jnp.float32, minval=-bound, maxval=bound))
        biases.append(jax.random.uniform(
            kb, (fan_out,), jnp.float32, minval=-bound, maxval=bound))
    return weights_t, biases


if __name__ == "__main__":
    key = jax.random.PRNGKey(0)
    key, kx = jax.random.split(key)

    B = 10                                  # small; exercises the ragged path
    x = jax.random.normal(kx, (B, DIMS[0]), jnp.float32)
    weights_t, biases = init_params(key)
    w_slab, b_slab = pack_params(weights_t, biases)

    out = consciousness_forward(x, w_slab, b_slab)
    out = jax.block_until_ready(out)

    # Reference mirroring the kernel numerics (bf16 operands, f32 accumulate,
    # exact erf-GELU in f32).
    h = x
    for li in range(N_LAYERS):
        h = jnp.dot(h.astype(jnp.bfloat16),
                    weights_t[li].astype(jnp.bfloat16),
                    preferred_element_type=jnp.float32) + biases[li]
        if li < N_LAYERS - 1:
            h = _gelu_exact(h)
    ref = jax.nn.softmax(h, axis=-1)

    assert out.shape == (B, DIMS[-1])
    assert jnp.allclose(jnp.sum(out, axis=-1), 1.0, atol=1e-5)
    assert jnp.allclose(out, ref, atol=2e-3, rtol=2e-3)

    print("KERNEL_OK")
</pallas_src>

<mosaic_0001>
module attributes {stable_mosaic.version = 11 : i64} {
  func.func @_mlp_kernel(%arg0: i32, %arg1: memref<16x48xf32, #tpu.memory_space<vmem>>, %arg2: memref<2304x256xbf16, #tpu.memory_space<vmem>>, %arg3: memref<9x256xf32, #tpu.memory_space<vmem>>, %arg4: memref<16x128xf32, #tpu.memory_space<vmem>>) attributes {dimension_semantics = [#tpu.dimension_semantics<parallel>], iteration_bounds = array<i64: 1>, scalar_prefetch = 0 : i64, scratch_operands = 0 : i64, tpu.core_type = #tpu.core_type<tc>, window_params = [{transform_indices = @transform_0, window_bounds = array<i64: 16, 48>}, {pipeline_mode = #tpu.pipeline_mode<synchronous>, transform_indices = @transform_1, window_bounds = array<i64: 2304, 256>}, {pipeline_mode = #tpu.pipeline_mode<synchronous>, transform_indices = @transform_2, window_bounds = array<i64: 9, 256>}, {transform_indices = @transform_3, window_bounds = array<i64: 16, 128>}]} {
    %c0 = arith.constant 0 : index
    %c0_0 = arith.constant 0 : index
    %0 = vector.load %arg1[%c0, %c0_0] : memref<16x48xf32, #tpu.memory_space<vmem>>, vector<16x48xf32>
    %c0_1 = arith.constant 0 : index
    %c0_2 = arith.constant 0 : index
    %1 = vector.load %arg2[%c0_1, %c0_2] : memref<2304x256xbf16, #tpu.memory_space<vmem>>, vector<48x256xbf16>
    %2 = arith.truncf %0 : vector<16x48xf32> to vector<16x48xbf16>
    %cst = arith.constant dense<0.000000e+00> : vector<16x256xf32>
    %3 = tpu.matmul %2, %1, %cst {dimension_numbers = #tpu.dot_dimension_numbers<[1], [0], [0], [1], [0, 0, 1, 1], [], []>} : vector<16x48xbf16>, vector<48x256xbf16>, vector<16x256xf32> -> vector<16x256xf32>
    %c0_3 = arith.constant 0 : index
    %c0_4 = arith.constant 0 : index
    %4 = vector.load %arg3[%c0_3, %c0_4] : memref<9x256xf32, #tpu.memory_space<vmem>>, vector<1x256xf32>
    %5 = vector.broadcast %4 : vector<1x256xf32> to vector<16x256xf32>
    %6 = arith.addf %3, %5 : vector<16x256xf32>
    %cst_5 = arith.constant 5.000000e-01 : f32
    %7 = vector.broadcast %cst_5 : f32 to vector<16x256xf32>
    %8 = arith.mulf %7, %6 : vector<16x256xf32>
    %cst_6 = arith.constant 0.707106769 : f32
    %9 = vector.broadcast %cst_6 : f32 to vector<16x256xf32>
    %10 = arith.mulf %6, %9 : vector<16x256xf32>
    %11 = math.erf %10 : vector<16x256xf32>
    %cst_7 = arith.constant 1.000000e+00 : f32
    %12 = vector.broadcast %cst_7 : f32 to vector<16x256xf32>
    %13 = arith.addf %12, %11 : vector<16x256xf32>
    %14 = arith.mulf %8, %13 : vector<16x256xf32>
    %c256 = arith.constant 256 : index
    %c0_8 = arith.constant 0 : index
    %15 = vector.load %arg2[%c256, %c0_8] : memref<2304x256xbf16, #tpu.memory_space<vmem>>, vector<256x128xbf16>
    %16 = arith.truncf %14 : vector<16x256xf32> to vector<16x256xbf16>
    %cst_9 = arith.constant dense<0.000000e+00> : vector<16x128xf32>
    %17 = tpu.matmul %16, %15, %cst_9 {dimension_numbers = #tpu.dot_dimension_numbers<[1], [0], [0], [1], [0, 0, 1, 1], [], []>} : vector<16x256xbf16>, vector<256x128xbf16>, vector<16x128xf32> -> vector<16x128xf32>
    %c1 = arith.constant 1 : index
    %c0_10 = arith.constant 0 : index
    %18 = vector.load %arg3[%c1, %c0_10] : memref<9x256xf32, #tpu.memory_space<vmem>>, vector<1x128xf32>
    %19 = vector.broadcast %18 : vector<1x128xf32> to vector<16x128xf32>
    %20 = arith.addf %17, %19 : vector<16x128xf32>
    %cst_11 = arith.constant 5.000000e-01 : f32
    %21 = vector.broadcast %cst_11 : f32 to vector<16x128xf32>
    %22 = arith.mulf %21, %20 : vector<16x128xf32>
    %cst_12 = arith.constant 0.707106769 : f32
    %23 = vector.broadcast %cst_12 : f32 to vector<16x128xf32>
    %24 = arith.mulf %20, %23 : vector<16x128xf32>
    %25 = math.erf %24 : vector<16x128xf32>
    %cst_13 = arith.constant 1.000000e+00 : f32
    %26 = vector.broadcast %cst_13 : f32 to vector<16x128xf32>
    %27 = arith.addf %26, %25 : vector<16x128xf32>
    %28 = arith.mulf %22, %27 : vector<16x128xf32>
    %c512 = arith.constant 512 : index
    %c0_14 = arith.constant 0 : index
    %29 = vector.load %arg2[%c512, %c0_14] : memref<2304x256xbf16, #tpu.memory_space<vmem>>, vector<128x128xbf16>
    %30 = arith.truncf %28 : vector<16x128xf32> to vector<16x128xbf16>
    %cst_15 = arith.constant dense<0.000000e+00> : vector<16x128xf32>
    %31 = tpu.matmul %30, %29, %cst_15 {dimension_numbers = #tpu.dot_dimension_numbers<[1], [0], [0], [1], [0, 0, 1, 1], [], []>} : vector<16x128xbf16>, vector<128x128xbf16>, vector<16x128xf32> -> vector<16x128xf32>
    %c2 = arith.constant 2 : index
    %c0_16 = arith.constant 0 : index
    %32 = vector.load %arg3[%c2, %c0_16] : memref<9x256xf32, #tpu.memory_space<vmem>>, vector<1x128xf32>
    %33 = vector.broadcast %32 : vector<1x128xf32> to vector<16x128xf32>
    %34 = arith.addf %31, %33 : vector<16x128xf32>
    %cst_17 = arith.constant 5.000000e-01 : f32
    %35 = vector.broadcast %cst_17 : f32 to vector<16x128xf32>
    %36 = arith.mulf %35, %34 : vector<16x128xf32>
    %cst_18 = arith.constant 0.707106769 : f32
    %37 = vector.broadcast %cst_18 : f32 to vector<16x128xf32>
    %38 = arith.mulf %34, %37 : vector<16x128xf32>
    %39 = math.erf %38 : vector<16x128xf32>
    %cst_19 = arith.constant 1.000000e+00 : f32
    %40 = vector.broadcast %cst_19 : f32 to vector<16x128xf32>
    %41 = arith.addf %40, %39 : vector<16x128xf32>
    %42 = arith.mulf %36, %41 : vector<16x128xf32>
    %c768 = arith.constant 768 : index
    %c0_20 = arith.constant 0 : index
    %43 = vector.load %arg2[%c768, %c0_20] : memref<2304x256xbf16, #tpu.memory_space<vmem>>, vector<128x128xbf16>
    %44 = arith.truncf %42 : vector<16x128xf32> to vector<16x128xbf16>
    %cst_21 = arith.constant dense<0.000000e+00> : vector<16x128xf32>
    %45 = tpu.matmul %44, %43, %cst_21 {dimension_numbers = #tpu.dot_dimension_numbers<[1], [0], [0], [1], [0, 0, 1, 1], [], []>} : vector<16x128xbf16>, vector<128x128xbf16>, vector<16x128xf32> -> vector<16x128xf32>
    %c3 = arith.constant 3 : index
    %c0_22 = arith.constant 0 : index
    %46 = vector.load %arg3[%c3, %c0_22] : memref<9x256xf32, #tpu.memory_space<vmem>>, vector<1x128xf32>
    %47 = vector.broadcast %46 : vector<1x128xf32> to vector<16x128xf32>
    %48 = arith.addf %45, %47 : vector<16x128xf32>
    %cst_23 = arith.constant 5.000000e-01 : f32
    %49 = vector.broadcast %cst_23 : f32 to vector<16x128xf32>
    %50 = arith.mulf %49, %48 : vector<16x128xf32>
    %cst_24 = arith.constant 0.707106769 : f32
    %51 = vector.broadcast %cst_24 : f32 to vector<16x128xf32>
    %52 = arith.mulf %48, %51 : vector<16x128xf32>
    %53 = math.erf %52 : vector<16x128xf32>
    %cst_25 = arith.constant 1.000000e+00 : f32
    %54 = vector.broadcast %cst_25 : f32 to vector<16x128xf32>
    %55 = arith.addf %54, %53 : vector<16x128xf32>
    %56 = arith.mulf %50, %55 : vector<16x128xf32>
    %c1024 = arith.constant 1024 : index
    %c0_26 = arith.constant 0 : index
    %57 = vector.load %arg2[%c1024, %c0_26] : memref<2304x256xbf16, #tpu.memory_space<vmem>>, vector<128x128xbf16>
    %58 = arith.truncf %56 : vector<16x128xf32> to vector<16x128xbf16>
    %cst_27 = arith.constant dense<0.000000e+00> : vector<16x128xf32>
    %59 = tpu.matmul %58, %57, %cst_27 {dimension_numbers = #tpu.dot_dimension_numbers<[1], [0], [0], [1], [0, 0, 1, 1], [], []>} : vector<16x128xbf16>, vector<128x128xbf16>, vector<16x128xf32> -> vector<16x128xf32>
    %c4 = arith.constant 4 : index
    %c0_28 = arith.constant 0 : index
    %60 = vector.load %arg3[%c4, %c0_28] : memref<9x256xf32, #tpu.memory_space<vmem>>, vector<1x128xf32>
    %61 = vector.broadcast %60 : vector<1x128xf32> to vector<16x128xf32>
    %62 = arith.addf %59, %61 : vector<16x128xf32>
    %cst_29 = arith.constant 5.000000e-01 : f32
    %63 = vector.broadcast %cst_29 : f32 to vector<16x128xf32>
    %64 = arith.mulf %63, %62 : vector<16x128xf32>
    %cst_30 = arith.constant 0.707106769 : f32
    %65 = vector.broadcast %cst_30 : f32 to vector<16x128xf32>
    %66 = arith.mulf %62, %65 : vector<16x128xf32>
    %67 = math.erf %66 : vector<16x128xf32>
    %cst_31 = arith.constant 1.000000e+00 : f32
    %68 = vector.broadcast %cst_31 : f32 to vector<16x128xf32>
    %69 = arith.addf %68, %67 : vector<16x128xf32>
    %70 = arith.mulf %64, %69 : vector<16x128xf32>
    %c1280 = arith.constant 1280 : index
    %c0_32 = arith.constant 0 : index
    %71 = vector.load %arg2[%c1280, %c0_32] : memref<2304x256xbf16, #tpu.memory_space<vmem>>, vector<128x128xbf16>
    %72 = arith.truncf %70 : vector<16x128xf32> to vector<16x128xbf16>
    %cst_33 = arith.constant dense<0.000000e+00> : vector<16x128xf32>
    %73 = tpu.matmul %72, %71, %cst_33 {dimension_numbers = #tpu.dot_dimension_numbers<[1], [0], [0], [1], [0, 0, 1, 1], [], []>} : vector<16x128xbf16>, vector<128x128xbf16>, vector<16x128xf32> -> vector<16x128xf32>
    %c5 = arith.constant 5 : index
    %c0_34 = arith.constant 0 : index
    %74 = vector.load %arg3[%c5, %c0_34] : memref<9x256xf32, #tpu.memory_space<vmem>>, vector<1x128xf32>
    %75 = vector.broadcast %74 : vector<1x128xf32> to vector<16x128xf32>
    %76 = arith.addf %73, %75 : vector<16x128xf32>
    %cst_35 = arith.constant 5.000000e-01 : f32
    %77 = vector.broadcast %cst_35 : f32 to vector<16x128xf32>
    %78 = arith.mulf %77, %76 : vector<16x128xf32>
    %cst_36 = arith.constant 0.707106769 : f32
    %79 = vector.broadcast %cst_36 : f32 to vector<16x128xf32>
    %80 = arith.mulf %76, %79 : vector<16x128xf32>
    %81 = math.erf %80 : vector<16x128xf32>
    %cst_37 = arith.constant 1.000000e+00 : f32
    %82 = vector.broadcast %cst_37 : f32 to vector<16x128xf32>
    %83 = arith.addf %82, %81 : vector<16x128xf32>
    %84 = arith.mulf %78, %83 : vector<16x128xf32>
    %c1536 = arith.constant 1536 : index
    %c0_38 = arith.constant 0 : index
    %85 = vector.load %arg2[%c1536, %c0_38] : memref<2304x256xbf16, #tpu.memory_space<vmem>>, vector<128x128xbf16>
    %86 = arith.truncf %84 : vector<16x128xf32> to vector<16x128xbf16>
    %cst_39 = arith.constant dense<0.000000e+00> : vector<16x128xf32>
    %87 = tpu.matmul %86, %85, %cst_39 {dimension_numbers = #tpu.dot_dimension_numbers<[1], [0], [0], [1], [0, 0, 1, 1], [], []>} : vector<16x128xbf16>, vector<128x128xbf16>, vector<16x128xf32> -> vector<16x128xf32>
    %c6 = arith.constant 6 : index
    %c0_40 = arith.constant 0 : index
    %88 = vector.load %arg3[%c6, %c0_40] : memref<9x256xf32, #tpu.memory_space<vmem>>, vector<1x128xf32>
    %89 = vector.broadcast %88 : vector<1x128xf32> to vector<16x128xf32>
    %90 = arith.addf %87, %89 : vector<16x128xf32>
    %cst_41 = arith.constant 5.000000e-01 : f32
    %91 = vector.broadcast %cst_41 : f32 to vector<16x128xf32>
    %92 = arith.mulf %91, %90 : vector<16x128xf32>
    %cst_42 = arith.constant 0.707106769 : f32
    %93 = vector.broadcast %cst_42 : f32 to vector<16x128xf32>
    %94 = arith.mulf %90, %93 : vector<16x128xf32>
    %95 = math.erf %94 : vector<16x128xf32>
    %cst_43 = arith.constant 1.000000e+00 : f32
    %96 = vector.broadcast %cst_43 : f32 to vector<16x128xf32>
    %97 = arith.addf %96, %95 : vector<16x128xf32>
    %98 = arith.mulf %92, %97 : vector<16x128xf32>
    %c1792 = arith.constant 1792 : index
    %c0_44 = arith.constant 0 : index
    %99 = vector.load %arg2[%c1792, %c0_44] : memref<2304x256xbf16, #tpu.memory_space<vmem>>, vector<128x128xbf16>
    %100 = arith.truncf %98 : vector<16x128xf32> to vector<16x128xbf16>
    %cst_45 = arith.constant dense<0.000000e+00> : vector<16x128xf32>
    %101 = tpu.matmul %100, %99, %cst_45 {dimension_numbers = #tpu.dot_dimension_numbers<[1], [0], [0], [1], [0, 0, 1, 1], [], []>} : vector<16x128xbf16>, vector<128x128xbf16>, vector<16x128xf32> -> vector<16x128xf32>
    %c7 = arith.constant 7 : index
    %c0_46 = arith.constant 0 : index
    %102 = vector.load %arg3[%c7, %c0_46] : memref<9x256xf32, #tpu.memory_space<vmem>>, vector<1x128xf32>
    %103 = vector.broadcast %102 : vector<1x128xf32> to vector<16x128xf32>
    %104 = arith.addf %101, %103 : vector<16x128xf32>
    %cst_47 = arith.constant 5.000000e-01 : f32
    %105 = vector.broadcast %cst_47 : f32 to vector<16x128xf32>
    %106 = arith.mulf %105, %104 : vector<16x128xf32>
    %cst_48 = arith.constant 0.707106769 : f32
    %107 = vector.broadcast %cst_48 : f32 to vector<16x128xf32>
    %108 = arith.mulf %104, %107 : vector<16x128xf32>
    %109 = math.erf %108 : vector<16x128xf32>
    %cst_49 = arith.constant 1.000000e+00 : f32
    %110 = vector.broadcast %cst_49 : f32 to vector<16x128xf32>
    %111 = arith.addf %110, %109 : vector<16x128xf32>
    %112 = arith.mulf %106, %111 : vector<16x128xf32>
    %c2048 = arith.constant 2048 : index
    %c0_50 = arith.constant 0 : index
    %113 = vector.load %arg2[%c2048, %c0_50] : memref<2304x256xbf16, #tpu.memory_space<vmem>>, vector<128x128xbf16>
    %114 = arith.truncf %112 : vector<16x128xf32> to vector<16x128xbf16>
    %cst_51 = arith.constant dense<0.000000e+00> : vector<16x128xf32>
    %115 = tpu.matmul %114, %113, %cst_51 {dimension_numbers = #tpu.dot_dimension_numbers<[1], [0], [0], [1], [0, 0, 1, 1], [], []>} : vector<16x128xbf16>, vector<128x128xbf16>, vector<16x128xf32> -> vector<16x128xf32>
    %c8 = arith.constant 8 : index
    %c0_52 = arith.constant 0 : index
    %116 = vector.load %arg3[%c8, %c0_52] : memref<9x256xf32, #tpu.memory_space<vmem>>, vector<1x128xf32>
    %117 = vector.broadcast %116 : vector<1x128xf32> to vector<16x128xf32>
    %118 = arith.addf %115, %117 : vector<16x128xf32>
    %119 = tpu.iota {dimensions = array<i32: 1>} : vector<16x128xi32>
    %c3_i32 = arith.constant 3 : i32
    %120 = vector.broadcast %c3_i32 : i32 to vector<16x128xi32>
    %121 = arith.cmpi slt, %119, %120 : vector<16x128xi32>
    %cst_53 = arith.constant 0xFF800000 : f32
    %122 = vector.broadcast %cst_53 : f32 to vector<16x128xf32>
    %123 = arith.select %121, %118, %122 : vector<16x128xi1>, vector<16x128xf32>
    %cst_54 = arith.constant dense<0xFF800000> : vector<16xf32>
    %124 = vector.multi_reduction <maximumf>, %123, %cst_54 [1] : vector<16x128xf32> to vector<16xf32>
    %125 = vector.shape_cast %124 : vector<16xf32> to vector<16x1xf32>
    %126 = vector.broadcast %125 : vector<16x1xf32> to vector<16x128xf32>
    %127 = arith.subf %118, %126 : vector<16x128xf32>
    %128 = math.exp %127 : vector<16x128xf32>
    %cst_55 = arith.constant 0.000000e+00 : f32
    %129 = vector.broadcast %cst_55 : f32 to vector<16x128xf32>
    %130 = arith.select %121, %128, %129 : vector<16x128xi1>, vector<16x128xf32>
    %cst_56 = arith.constant dense<0.000000e+00> : vector<16xf32>
    %131 = vector.multi_reduction <add>, %130, %cst_56 [1] : vector<16x128xf32> to vector<16xf32>
    %132 = vector.shape_cast %131 : vector<16xf32> to vector<16x1xf32>
    %133 = tpu.reciprocal %132 : vector<16x1xf32> -> vector<16x1xf32>
    %134 = vector.broadcast %133 : vector<16x1xf32> to vector<16x128xf32>
    %135 = arith.mulf %130, %134 : vector<16x128xf32>
    %c0_57 = arith.constant 0 : index
    %c0_58 = arith.constant 0 : index
    %136 = vector.load %arg4[%c0_57, %c0_58] : memref<16x128xf32, #tpu.memory_space<vmem>>, vector<16x128xf32>
    tpu.vector_store %arg4[%c0_57, %c0_58], %135 {strides = array<i32>} : memref<16x128xf32, #tpu.memory_space<vmem>>, vector<16x128xf32>,
    return
  }
  func.func @transform_0(%arg0: i32) -> (i32, i32) {
    %c0_i32 = arith.constant 0 : i32
    %c0_i32_0 = arith.constant 0 : i32
    return %arg0, %c0_i32 : i32, i32
  }
  func.func @transform_1(%arg0: i32) -> (i32, i32) {
    %c0_i32 = arith.constant 0 : i32
    %c0_i32_0 = arith.constant 0 : i32
    %c0_i32_1 = arith.constant 0 : i32
    return %c0_i32, %c0_i32_0 : i32, i32
  }
  func.func @transform_2(%arg0: i32) -> (i32, i32) {
    %c0_i32 = arith.constant 0 : i32
    %c0_i32_0 = arith.constant 0 : i32
    %c0_i32_1 = arith.constant 0 : i32
    return %c0_i32, %c0_i32_0 : i32, i32
  }
  func.func @transform_3(%arg0: i32) -> (i32, i32) {
    %c0_i32 = arith.constant 0 : i32
    %c0_i32_0 = arith.constant 0 : i32
    return %arg0, %c0_i32 : i32, i32
  }
}

</mosaic_0001>

<bundles_post_ra>
// kernel: tpu_custom_call.1
= control target key start
LH: loop header
LB: loop body
LE: loop exit
PB: predicated region body
PF: predicated region fallthrough
CT: control target
= control target key end

     0   :  { %8 = vsyncpa [#allocation3], 0  ;;  %s1916_s0 = inlined_call_operand.hbm [shape: f32[16,48], index: 0, kind: input, shape index: {}]   ;;  %s1917_s1 = inlined_call_operand.hbm [shape: bf16[2304,256], index: 1, kind: input, shape index: {}]   ;;  %s1918_s2 = inlined_call_operand.hbm [shape: f32[9,256], index: 2, kind: input, shape index: {}]   ;;  %s1919_s3 = inlined_call_operand.hbm [shape: f32[16,128], index: 3, kind: output, shape index: {}]  }
   0x1   :  { %9 = vsyncpa [#allocation6], 0 }
   0x2   :  { %10 = vsyncpa [#allocation4], 0  ;;  %s1745_s12 = smov [#allocation5]   ;;  %s1746_s14 = smov [#allocation2]  }
   0x3   :  { %s28_s13 = sshll.u32 %s1745_s12, 4  ;;  %s16_s15 = sshll.u32 %s1746_s14, 4  ;;  %s29_s13 = int_to_ptr.vmem [resolvable:$true] %s28_s13  ;;  %s1776_s15 = int_to_ptr.vmem [resolvable:$true] %s16_s15 }
   0x4   :  { %s1651_s18 = scalar_lea.hbm %s1917_s1, 36864 }
   0x5   :  { %p1652_p0 = scmp.ne.s32.totalorder %s1917_s1, %s1651_s18  ;;  %p1655_p1 = scmp.lt.u32.totalorder %s1651_s18, %s1917_s1 }
   0x7   :  { %p1657_p2 = pnand %p1655_p1, %p1652_p0 }
   0x9   :  { %1660 = shalt.err (!%p1657_p2)
}
   0xa   :  { %s1661_s23 = scalar_lea.vmem %s29_s13, 36864  ;;  %p1666_p4 = scmp.lt.s32.totalorder %s29_s13, %s29_s13 }
   0xb   :  { %p1662_p3 = scmp.ne.s32.totalorder %s29_s13, %s1661_s23  ;;  %p1667_p5 = scmp.lt.s32.totalorder %s1661_s23, %s1661_s23 }
   0xd   :  { %p1668_p6 = por %p1667_p5, %p1666_p4 }
   0xf   :  { %p1669_p7 = pnand %p1668_p6, %p1662_p3 }
  0x11   :  { %1672 = shalt.err (!%p1669_p7)
}
  0x12   :  { %s1747_s24 = smov 128   ;;  %s1748_s25 = smov 8  }
  0x13   :  { %34 = dma.hbm_to_vmem [thread:$0]  %s1917_s1, 36864, %s29_s13, [#allocation6], %s1747_s24, %s1747_s24, %s1748_s25  }
  0x14   :  { %s1673_s30 = scalar_lea.hbm %s1916_s0, 256 }
  0x15   :  { %p1674_p8 = scmp.ne.s32.totalorder %s1916_s0, %s1673_s30  ;;  %p1677_p9 = scmp.lt.u32.totalorder %s1673_s30, %s1916_s0 }
  0x17   :  { %p1679_p10 = pnand %p1677_p9, %p1674_p8 }
  0x19   :  { %1682 = shalt.err (!%p1679_p10)
}
  0x1a   :  { %s1683_s8 = scalar_lea.vmem %s1776_s15, 256  ;;  %p1688_p12 = scmp.lt.s32.totalorder %s1776_s15, %s1776_s15 }
  0x1b   :  { %p1684_p11 = scmp.ne.s32.totalorder %s1776_s15, %s1683_s8  ;;  %p1689_p13 = scmp.lt.s32.totalorder %s1683_s8, %s1683_s8 }
  0x1d   :  { %p1690_p0 = por %p1689_p13, %p1688_p12 }
  0x1f   :  { %p1691_p1 = pnand %p1690_p0, %p1684_p11 }
  0x21   :  { %1694 = shalt.err (!%p1691_p1)
}
  0x22   :  { %22 = dma.hbm_to_vmem [thread:$0]  %s1916_s0, 256, %s1776_s15, [#allocation3], %s1747_s24, %s1747_s24, %s1748_s25  }
  0x23   :  { %s1749_s10 = smov [#allocation7]   ;;  %s1695_s14 = scalar_lea.hbm %s1918_s2, 512 }
  0x24   :  { %s40_s11 = sshll.u32 %s1749_s10, 4  ;;  %p1696_p2 = scmp.ne.s32.totalorder %s1918_s2, %s1695_s14  ;;  %s41_s11 = int_to_ptr.vmem [resolvable:$true] %s40_s11 }
  0x25   :  { %p1699_p3 = scmp.lt.u32.totalorder %s1695_s14, %s1918_s2 }
  0x27   :  { %p1701_p4 = pnand %p1699_p3, %p1696_p2 }
  0x29   :  { %1704 = shalt.err (!%p1701_p4)
}
  0x2a   :  { %s1705_s20 = scalar_lea.vmem %s41_s11, 512  ;;  %p1710_p6 = scmp.lt.s32.totalorder %s41_s11, %s41_s11 }
  0x2b   :  { %p1706_p5 = scmp.ne.s32.totalorder %s41_s11, %s1705_s20  ;;  %p1711_p7 = scmp.lt.s32.totalorder %s1705_s20, %s1705_s20 }
  0x2d   :  { %p1712_p8 = por %p1711_p7, %p1710_p6 }
  0x2f   :  { %p1713_p9 = pnand %p1712_p8, %p1706_p5 }
  0x31   :  { %1716 = shalt.err (!%p1713_p9)
}
  0x32   :  { %s1750_s0 = smov 256   ;;  %s1751_s15 = smov 16  }
  0x33   :  { %46 = dma.hbm_to_vmem [thread:$0]  %s1918_s2, 512, %s41_s11, [#allocation6], %s1750_s0, %s1750_s0, %s1751_s15  }
  0x34   :  { %1739 = dma.done.wait [#allocation3], 256  }
  0x35   :  { %1740 = vsyncadd [#allocation3], 4294967040 }
  0x36   :  { %1741 = dma.done.wait [#allocation6], 37376  }
  0x37   :  { %1742 = vsyncadd [#allocation6], 4294929920  ;;  %v1752_v0 = vmov 0   ;;  %v1526_v1 = vld [vmem:[#allocation5 + $0x4] ss:$8 sps:$4 sm:$0xff]   ;;  %v57_v7 = vld [vmem:[#allocation2] sm:$0xff]  ;;  %v68_v28 = vlaneseq }
  0x38   :  { %144 = vmatprep.mubr.bf16.mxu0 %v1752_v0  ;;  %v1528_v2 = vld [vmem:[#allocation5] ss:$8 sps:$4 sm:$0xff]   ;;  %112 = vmatprep.subr.bf16.mxu0 %v1526_v1  ;;  %v1529_v3 = vld [vmem:[#allocation5 + $0x14] ss:$8 sps:$4 sm:$0xff]   ;;  %v1531_v4 = vld [vmem:[#allocation5 + $0x10] ss:$8 sps:$4 sm:$0xff]  }
  0x39   :  { %113 = vmatpush1.bf16.msra.mxu0 %v1528_v2  ;;  %v1532_v5 = vld [vmem:[#allocation5 + $0x24] ss:$8 sps:$4 sm:$0xff]   ;;  %v1534_v6 = vld [vmem:[#allocation5 + $0x20] ss:$8 sps:$4 sm:$0xff]   ;;  %v58_v8 = vld [vmem:[#allocation2 + $0x8] sm:$0xff]  ;;  %vm108_vm0 = vcmask 392192  }
  0x3a   :  { %114 = vmatprep.subr.bf16.mxu0 %v1529_v3  ;;  %v1535_v9 = vld [vmem:[#allocation5 + $0x180] ss:$8 sps:$4 sm:$0xff]   ;;  %v1537_v11 = vld [vmem:[#allocation5 + $0x190] ss:$8 sps:$4 sm:$0xff]   ;;  %v65_v13 = vpack.c.bf16 %v58_v8, %v57_v7  ;;  %v1753_v27 = vmov 0.0   ;;  %v69_v29 = vshrl.u32 %v68_v28, 7 }
  0x3b   :  { %v1536_v10 = vld [vmem:[#allocation5 + $0x100] ss:$8 sps:$4 sm:$0xff]   ;;  %1290 = vmatprep.subr.bf16.mxu1 %v1535_v9  ;;  %v1538_v12 = vld [vmem:[#allocation5 + $0x110] ss:$8 sps:$4 sm:$0xff]   ;;  %vm1754_vm1 = vmmov 0   ;;  %s1755_s2 = smov [#allocation8]  }
  0x3c   :  { %1291 = vmatpush3.bf16.msra.mxu1 %v1536_v10  ;;  %v1539_v14 = vld [vmem:[#allocation5 + $0x1a0] ss:$8 sps:$4 sm:$0xff]   ;;  %v1541_v16 = vld [vmem:[#allocation5 + $0x1b0] ss:$8 sps:$4 sm:$0xff]   ;;  %v70_v30 = vsub.s32 0, %v69_v29  ;;  %v74_v32 = vsub.s32 1, %v69_v29 }
  0x3d   :  { %115 = vmatpush1.bf16.msra.mxu0 %v1531_v4  ;;  %1292 = vmatprep.subr.bf16.mxu1 %v1537_v11  ;;  %v1540_v15 = vld [vmem:[#allocation5 + $0x120] ss:$8 sps:$4 sm:$0xff]   ;;  %v1542_v17 = vld [vmem:[#allocation5 + $0x130] ss:$8 sps:$4 sm:$0xff]   ;;  %s1198_s23 = sshll.u32 %s1755_s2, 4  ;;  %s1199_s23 = int_to_ptr.vmem [resolvable:$true] %s1198_s23 }
  0x3e   :  { %116 = vmatprep.subr.bf16.mxu0 %v1532_v5  ;;  %v1543_v18 = vld [vmem:[#allocation5 + $0x1c0] ss:$8 sps:$4 sm:$0xff]   ;;  %v1545_v20 = vld [vmem:[#allocation5 + $0x1d0] ss:$8 sps:$4 sm:$0xff]   ;;  %s1717_s26 = scalar_lea.vmem %s1199_s23, 256  ;;  %p1722_p11 = scmp.lt.s32.totalorder %s1199_s23, %s1199_s23 }
  0x3f   :  { %v1544_v19 = vld [vmem:[#allocation5 + $0x140] ss:$8 sps:$4 sm:$0xff]   ;;  %v1546_v21 = vld [vmem:[#allocation5 + $0x150] ss:$8 sps:$4 sm:$0xff]   ;;  %p1718_p10 = scmp.ne.s32.totalorder %s1199_s23, %s1717_s26  ;;  %p1723_p12 = scmp.lt.s32.totalorder %s1717_s26, %s1717_s26 }
  0x40   :  { %1293 = vmatpush3.bf16.msra.mxu1 %v1538_v12  ;;  %v1547_v22 = vld [vmem:[#allocation5 + $0x1e0] ss:$8 sps:$4 sm:$0xff]   ;;  %v1549_v24 = vld [vmem:[#allocation5 + $0x1f0] ss:$8 sps:$4 sm:$0xff]  }
  0x41   :  { %117 = vmatpush1.bf16.msra.mxu0 %v1534_v6  ;;  %1294 = vmatprep.subr.bf16.mxu1 %v1539_v14  ;;  %v1548_v23 = vld [vmem:[#allocation5 + $0x160] ss:$8 sps:$4 sm:$0xff]   ;;  %v1550_v25 = vld [vmem:[#allocation5 + $0x170] ss:$8 sps:$4 sm:$0xff]   ;;  %p1724_p13 = por %p1723_p12, %p1722_p11 }
  0x42   :  { %v1551_v26 = vld [vmem:[#allocation5 + $0x200] ss:$8 sps:$4 sm:$0xff]   ;;  %1375 = vmatprep.subr.bf16.mxu0 %v1753_v27  ;;  %v1552_v1 = vld [vmem:[#allocation5 + $0x210] ss:$8 sps:$4 sm:$0xff]  }
  0x43   :  { %v66_v31 = vld [vmem:[#allocation7] ss:$8 sm:$0x3]  ;;  %v1554_v3 = vld [vmem:[#allocation5 + $0x230] ss:$8 sps:$4 sm:$0xff]   ;;  %p1725_p0 = pnand %p1724_p13, %p1718_p10 }
  0x44   :  { %1217 = vmatmul.mubr.msk.bf16.vlgmr.msra.gmra.mrb[0].mxu0 %vm108_vm0, %v65_v13  ;;  %1295 = vmatpush3.bf16.msra.mxu1 %v1540_v15  ;;  %v71_v33 = vrot.slane %v66_v31, %v70_v30  ;;  %v75_v34 = vrot.slane %v66_v31, %v74_v32  ;;  %v1553_v2 = vld [vmem:[#allocation5 + $0x220] ss:$8 sps:$4 sm:$0xff]   ;;  %v1556_v5 = vld [vmem:[#allocation5 + $0x250] ss:$8 sps:$4 sm:$0xff]  }
  0x45   :  { %1296 = vmatprep.subr.bf16.mxu1 %v1541_v16  ;;  %1376 = vmatpush3.bf16.msra.mxu0 %v1551_v26  ;;  %v1555_v4 = vld [vmem:[#allocation5 + $0x240] ss:$8 sps:$4 sm:$0xff]   ;;  %v1558_v7 = vld [vmem:[#allocation5 + $0x270] ss:$8 sps:$4 sm:$0xff]  }
  0x46   :  { %1377 = vmatprep.subr.bf16.mxu0 %v1753_v27  ;;  %v1557_v6 = vld [vmem:[#allocation5 + $0x260] ss:$8 sps:$4 sm:$0xff]   ;;  %1391 = vmatprep.mubr.msk.bf16.mxu0 %vm1754_vm1, %v1753_v27  ;;  %v1560_v9 = vld [vmem:[#allocation5 + $0x310] ss:$8 sps:$4 sm:$0xff]  }
  0x47   :  { %v1559_v8 = vld [vmem:[#allocation5 + $0x300] ss:$8 sps:$4 sm:$0xff]  }
  0x48   :  { %1297 = vmatpush3.bf16.msra.mxu1 %v1542_v17  ;;  %v209_v11 = vld [vmem:[#allocation7 + $0x1] ss:$0 sm:$0xff] }
  0x49   :  { %1298 = vmatprep.subr.bf16.mxu1 %v1543_v18  ;;  %1378 = vmatpush3.bf16.msra.mxu0 %v1552_v1  ;;  %v1561_v32 = vld [vmem:[#allocation5 + $0x320] ss:$8 sps:$4 sm:$0xff]   ;;  %v1576_v1 = vld [vmem:[#allocation5 + $0x510] ss:$8 sps:$4 sm:$0xff]  }
  0x4a   :  { %1379 = vmatprep.subr.bf16.mxu0 %v1753_v27 }
  0x4c   :  { %1299 = vmatpush3.bf16.msra.mxu1 %v1544_v19 }
  0x4d   :  { %1300 = vmatprep.subr.bf16.mxu1 %v1545_v20  ;;  %1380 = vmatpush3.bf16.msra.mxu0 %v1553_v2  ;;  %v491_v2 = vld [vmem:[#allocation7 + $0x3] ss:$0 sm:$0xff] }
  0x4e   :  { %1381 = vmatprep.subr.bf16.mxu0 %v1753_v27 }
  0x50   :  { %1301 = vmatpush3.bf16.msra.mxu1 %v1546_v21 }
  0x51   :  { %1302 = vmatprep.subr.bf16.mxu1 %v1547_v22  ;;  %1382 = vmatpush3.bf16.msra.mxu0 %v1554_v3 }
  0x52   :  { %1383 = vmatprep.subr.bf16.mxu0 %v1753_v27 }
  0x54   :  { %1303 = vmatpush3.bf16.msra.mxu1 %v1548_v23 }
  0x55   :  { %1304 = vmatprep.subr.bf16.mxu1 %v1549_v24  ;;  %1384 = vmatpush3.bf16.msra.mxu0 %v1555_v4 }
  0x56   :  { %1385 = vmatprep.subr.bf16.mxu0 %v1753_v27 }
  0x58   :  { %1305 = vmatpush3.bf16.msra.mxu1 %v1550_v25 }
  0x59   :  { %1395 = vmatprep.subr.bf16.mxu1 %v1753_v27  ;;  %1386 = vmatpush3.bf16.msra.mxu0 %v1556_v5 }
  0x5a   :  { %1387 = vmatprep.subr.bf16.mxu0 %v1753_v27 }
  0x5d   :  { %1388 = vmatpush3.bf16.msra.mxu0 %v1557_v6 }
  0x5e   :  { %1389 = vmatprep.subr.bf16.mxu0 %v1753_v27 }
  0x61   :  { %1390 = vmatpush3.bf16.msra.mxu0 %v1558_v7 }
  0x62   :  { %1415 = vmatprep.subr.bf16.mxu0 %v1753_v27 }
 0x117   :  { %v146_v35 = vpop.f32.mrb[0].mxu0 }
 0x118   :  { %v147_v36 = vadd.f32 %v146_v35, %v71_v33  ;;  %v148_v37 = vpop.f32.mrb[1].mxu0  ;;  %v1564_v35 = vld [vmem:[#allocation5 + $0x350] ss:$8 sps:$4 sm:$0xff]  }
 0x119   :  { %v149_v38 = vadd.f32 %v148_v37, %v75_v34  ;;  %v150_v39 = vpop.f32.mrb[2].mxu0  ;;  %v1566_v37 = vld [vmem:[#allocation5 + $0x370] ss:$8 sps:$4 sm:$0xff]  }
 0x11a   :  { %v159_v40 = vmul.f32 0.70710677, %v147_v36  ;;  %v151_v41 = vadd.f32 %v150_v39, %v71_v33  ;;  %v152_v42 = vpop.f32.mrb[3].mxu0  ;;  %v155_v53 = vmul.f32 0.5, %v147_v36  ;;  %v1562_v33 = vld [vmem:[#allocation5 + $0x330] ss:$8 sps:$4 sm:$0xff]  }
 0x11b   :  { %v160_v43 = vmul.f32 0.70710677, %v149_v38  ;;  %v153_v44 = vadd.f32 %v152_v42, %v75_v34  ;;  %v156_v56 = vmul.f32 0.5, %v149_v38  ;;  %v1563_v34 = vld [vmem:[#allocation5 + $0x340] ss:$8 sps:$4 sm:$0xff]  }
 0x11c   :  { %1607 = verf.f32 %v159_v40  ;;  %v161_v45 = vmul.f32 0.70710677, %v151_v41  ;;  %v157_v54 = vmul.f32 0.5, %v151_v41  ;;  %v1565_v36 = vld [vmem:[#allocation5 + $0x360] ss:$8 sps:$4 sm:$0xff]  }
 0x11d   :  { %1609 = verf.f32 %v160_v43  ;;  %v162_v46 = vmul.f32 0.70710677, %v153_v44  ;;  %v158_v57 = vmul.f32 0.5, %v153_v44  ;;  %v1567_v38 = vld [vmem:[#allocation5 + $0x400] ss:$8 sps:$4 sm:$0xff]  }
 0x11e   :  { %1611 = verf.f32 %v161_v45  ;;  %v1568_v39 = vld [vmem:[#allocation5 + $0x410] ss:$8 sps:$4 sm:$0xff]   ;;  %v374_v40 = vld [vmem:[#allocation7 + $0x2] ss:$0 sm:$0xff] }
 0x11f   :  { %1613 = verf.f32 %v162_v46 }
 0x126   :  { %v1608_v47 = vpop.eup %1607 }
 0x127   :  { %v1610_v48 = vpop.eup %1609  ;;  %v167_v49 = vadd.f32 1.0, %v1608_v47 }
 0x128   :  { %v1612_v50 = vpop.eup %1611  ;;  %v168_v51 = vadd.f32 1.0, %v1610_v48 }
 0x129   :  { %v1614_v52 = vpop.eup %1613  ;;  %v169_v55 = vadd.f32 1.0, %v1612_v50  ;;  %v171_v59 = vmul.f32 %v167_v49, %v155_v53 }
 0x12a   :  { %v170_v58 = vadd.f32 1.0, %v1614_v52  ;;  %v172_v61 = vmul.f32 %v168_v51, %v156_v56 }
 0x12b   :  { %v173_v60 = vmul.f32 %v169_v55, %v157_v54 }
 0x12c   :  { %v174_v62 = vmul.f32 %v170_v58, %v158_v57  ;;  %v1569_v58 = vld [vmem:[#allocation5 + $0x420] ss:$8 sps:$4 sm:$0xff]  }
 0x12d   :  { %v207_v63 = vpack.c.bf16 %v173_v60, %v171_v59  ;;  %v1570_v59 = vld [vmem:[#allocation5 + $0x430] ss:$8 sps:$4 sm:$0xff]   ;;  %v1571_v60 = vld [vmem:[#allocation5 + $0x440] ss:$8 sps:$4 sm:$0xff]  }
 0x12e   :  { %v208_v0 = vpack.c.bf16 %v174_v62, %v172_v61  ;;  %v1572_v61 = vld [vmem:[#allocation5 + $0x450] ss:$8 sps:$4 sm:$0xff]   ;;  %v1573_v62 = vld [vmem:[#allocation5 + $0x460] ss:$8 sps:$4 sm:$0xff]  }
 0x130   :  { %338 = vmatprep.mubr.bf16.mxu1 %v208_v0  ;;  %v1575_v0 = vld [vmem:[#allocation5 + $0x500] ss:$8 sps:$4 sm:$0xff]  }
 0x131   :  { %339 = vmatmul.mubr.bf16.vlgmr.msra.gmra.mrb[0].mxu1 %v207_v63  ;;  %v1574_v63 = vld [vmem:[#allocation5 + $0x470] ss:$8 sps:$4 sm:$0xff]  }
 0x132   :  { %1411 = vmatprep.mubr.msk.bf16.mxu1 %vm1754_vm1, %v1753_v27  ;;  %1396 = vmatpush3.bf16.msra.mxu1 %v1559_v8 }
 0x133   :  { %1397 = vmatprep.subr.bf16.mxu1 %v1753_v27 }
 0x136   :  { %1398 = vmatpush3.bf16.msra.mxu1 %v1560_v9 }
 0x137   :  { %1399 = vmatprep.subr.bf16.mxu1 %v1753_v27 }
 0x13a   :  { %1400 = vmatpush3.bf16.msra.mxu1 %v1561_v32 }
 0x13b   :  { %1401 = vmatprep.subr.bf16.mxu1 %v1753_v27 }
 0x13e   :  { %1402 = vmatpush3.bf16.msra.mxu1 %v1562_v33 }
 0x13f   :  { %1403 = vmatprep.subr.bf16.mxu1 %v1753_v27 }
 0x142   :  { %1404 = vmatpush3.bf16.msra.mxu1 %v1563_v34 }
 0x143   :  { %1405 = vmatprep.subr.bf16.mxu1 %v1753_v27 }
 0x146   :  { %1406 = vmatpush3.bf16.msra.mxu1 %v1564_v35 }
 0x147   :  { %1407 = vmatprep.subr.bf16.mxu1 %v1753_v27 }
 0x14a   :  { %1408 = vmatpush3.bf16.msra.mxu1 %v1565_v36 }
 0x14b   :  { %1409 = vmatprep.subr.bf16.mxu1 %v1753_v27 }
 0x14e   :  { %1410 = vmatpush3.bf16.msra.mxu1 %v1566_v37 }
 0x14f   :  { %1435 = vmatprep.subr.bf16.mxu1 %v1753_v27 }
 0x204   :  { %v1306_v10 = vpop.f32.mrb[0].mxu1 }
 0x205   :  { %v1307_v12 = vpop.f32.mrb[1].mxu1 }
 0x206   :  { %v1308_v13 = vadd.f32 %v1307_v12, %v1306_v10  ;;  %v1309_v14 = vpop.f32.mrb[2].mxu1 }
 0x207   :  { %v1310_v15 = vpop.f32.mrb[3].mxu1 }
 0x208   :  { %v341_v16 = vadd.f32 %v1308_v13, %v209_v11  ;;  %v1311_v17 = vadd.f32 %v1310_v15, %v1309_v14 }
 0x20a   :  { %v349_v18 = vmul.f32 0.70710677, %v341_v16  ;;  %v344_v19 = vadd.f32 %v1311_v17, %v209_v11  ;;  %v347_v24 = vmul.f32 0.5, %v341_v16 }
 0x20c   :  { %1615 = verf.f32 %v349_v18  ;;  %v350_v20 = vmul.f32 0.70710677, %v344_v19  ;;  %v348_v25 = vmul.f32 0.5, %v344_v19 }
 0x20e   :  { %1617 = verf.f32 %v350_v20  ;;  %v1577_v20 = vld [vmem:[#allocation5 + $0x520] ss:$8 sps:$4 sm:$0xff]  }
 0x216   :  { %v1616_v21 = vpop.eup %1615 }
 0x217   :  { %v353_v22 = vadd.f32 1.0, %v1616_v21  ;;  %v1578_v21 = vld [vmem:[#allocation5 + $0x530] ss:$8 sps:$4 sm:$0xff]  }
 0x218   :  { %v1618_v23 = vpop.eup %1617 }
 0x219   :  { %v354_v26 = vadd.f32 1.0, %v1618_v23  ;;  %v355_v29 = vmul.f32 %v353_v22, %v347_v24  ;;  %v1579_v22 = vld [vmem:[#allocation5 + $0x540] ss:$8 sps:$4 sm:$0xff]   ;;  %v1580_v23 = vld [vmem:[#allocation5 + $0x550] ss:$8 sps:$4 sm:$0xff]  }
 0x21a   :  { %v1581_v24 = vld [vmem:[#allocation5 + $0x560] ss:$8 sps:$4 sm:$0xff]  }
 0x21b   :  { %v356_v30 = vmul.f32 %v354_v26, %v348_v25  ;;  %v1582_v25 = vld [vmem:[#allocation5 + $0x570] ss:$8 sps:$4 sm:$0xff]   ;;  %v1583_v26 = vld [vmem:[#allocation5 + $0x600] ss:$8 sps:$4 sm:$0xff]  }
 0x21d   :  { %v373_v31 = vpack.c.bf16 %v356_v30, %v355_v29  ;;  %v1584_v29 = vld [vmem:[#allocation5 + $0x610] ss:$8 sps:$4 sm:$0xff]   ;;  %v608_v30 = vld [vmem:[#allocation7 + $0x4] ss:$0 sm:$0xff] }
 0x21f   :  { %1392 = vmatmul.mubr.bf16.vlgmr.msra.gmra.mrb[4].mxu0 %v373_v31 }
 0x220   :  { %1431 = vmatprep.mubr.msk.bf16.mxu0 %vm1754_vm1, %v1753_v27  ;;  %1416 = vmatpush3.bf16.msra.mxu0 %v1567_v38 }
 0x221   :  { %1417 = vmatprep.subr.bf16.mxu0 %v1753_v27 }
 0x224   :  { %1418 = vmatpush3.bf16.msra.mxu0 %v1568_v39 }
 0x225   :  { %1419 = vmatprep.subr.bf16.mxu0 %v1753_v27 }
 0x228   :  { %1420 = vmatpush3.bf16.msra.mxu0 %v1569_v58 }
 0x229   :  { %1421 = vmatprep.subr.bf16.mxu0 %v1753_v27 }
 0x22c   :  { %1422 = vmatpush3.bf16.msra.mxu0 %v1570_v59 }
 0x22d   :  { %1423 = vmatprep.subr.bf16.mxu0 %v1753_v27 }
 0x230   :  { %1424 = vmatpush3.bf16.msra.mxu0 %v1571_v60 }
 0x231   :  { %1425 = vmatprep.subr.bf16.mxu0 %v1753_v27 }
 0x234   :  { %1426 = vmatpush3.bf16.msra.mxu0 %v1572_v61 }
 0x235   :  { %1427 = vmatprep.subr.bf16.mxu0 %v1753_v27 }
 0x238   :  { %1428 = vmatpush3.bf16.msra.mxu0 %v1573_v62 }
 0x239   :  { %1429 = vmatprep.subr.bf16.mxu0 %v1753_v27 }
 0x23c   :  { %1430 = vmatpush3.bf16.msra.mxu0 %v1574_v63 }
 0x23d   :  { %1455 = vmatprep.subr.bf16.mxu0 %v1753_v27 }
 0x2f2   :  { %v457_v41 = vpop.f32.mrb[4].mxu0 }
 0x2f3   :  { %v458_v42 = vadd.f32 %v457_v41, %v374_v40  ;;  %v1393_v43 = vpop.f32.mrb[5].mxu0 }
 0x2f4   :  { %v460_v44 = vpop.f32.mrb[6].mxu0 }
 0x2f5   :  { %v466_v45 = vmul.f32 0.70710677, %v458_v42  ;;  %v461_v46 = vadd.f32 %v460_v44, %v374_v40  ;;  %v1394_v47 = vpop.f32.mrb[7].mxu0  ;;  %v464_v52 = vmul.f32 0.5, %v458_v42 }
 0x2f7   :  { %1619 = verf.f32 %v466_v45  ;;  %v467_v48 = vmul.f32 0.70710677, %v461_v46  ;;  %v465_v53 = vmul.f32 0.5, %v461_v46 }
 0x2f9   :  { %1621 = verf.f32 %v467_v48  ;;  %v1585_v48 = vld [vmem:[#allocation5 + $0x620] ss:$8 sps:$4 sm:$0xff]  }
 0x301   :  { %v1620_v49 = vpop.eup %1619 }
 0x302   :  { %v470_v50 = vadd.f32 1.0, %v1620_v49  ;;  %v1586_v49 = vld [vmem:[#allocation5 + $0x630] ss:$8 sps:$4 sm:$0xff]  }
 0x303   :  { %v1622_v51 = vpop.eup %1621 }
 0x304   :  { %v471_v54 = vadd.f32 1.0, %v1622_v51  ;;  %v472_v55 = vmul.f32 %v470_v50, %v464_v52  ;;  %v1587_v50 = vld [vmem:[#allocation5 + $0x640] ss:$8 sps:$4 sm:$0xff]   ;;  %v1588_v51 = vld [vmem:[#allocation5 + $0x650] ss:$8 sps:$4 sm:$0xff]  }
 0x305   :  { %v1589_v52 = vld [vmem:[#allocation5 + $0x660] ss:$8 sps:$4 sm:$0xff]  }
 0x306   :  { %v473_v56 = vmul.f32 %v471_v54, %v465_v53  ;;  %v1590_v53 = vld [vmem:[#allocation5 + $0x670] ss:$8 sps:$4 sm:$0xff]   ;;  %v1591_v54 = vld [vmem:[#allocation5 + $0x700] ss:$8 sps:$4 sm:$0xff]  }
 0x308   :  { %v490_v57 = vpack.c.bf16 %v473_v56, %v472_v55  ;;  %v1592_v55 = vld [vmem:[#allocation5 + $0x710] ss:$8 sps:$4 sm:$0xff]   ;;  %v725_v56 = vld [vmem:[#allocation7 + $0x5] ss:$0 sm:$0xff] }
 0x30a   :  { %1412 = vmatmul.mubr.bf16.vlgmr.msra.gmra.mrb[4].mxu1 %v490_v57 }
 0x30b   :  { %1451 = vmatprep.mubr.msk.bf16.mxu1 %vm1754_vm1, %v1753_v27  ;;  %1436 = vmatpush3.bf16.msra.mxu1 %v1575_v0 }
 0x30c   :  { %1437 = vmatprep.subr.bf16.mxu1 %v1753_v27 }
 0x30f   :  { %1438 = vmatpush3.bf16.msra.mxu1 %v1576_v1 }
 0x310   :  { %1439 = vmatprep.subr.bf16.mxu1 %v1753_v27 }
 0x313   :  { %1440 = vmatpush3.bf16.msra.mxu1 %v1577_v20 }
 0x314   :  { %1441 = vmatprep.subr.bf16.mxu1 %v1753_v27 }
 0x317   :  { %1442 = vmatpush3.bf16.msra.mxu1 %v1578_v21 }
 0x318   :  { %1443 = vmatprep.subr.bf16.mxu1 %v1753_v27 }
 0x31b   :  { %1444 = vmatpush3.bf16.msra.mxu1 %v1579_v22 }
 0x31c   :  { %1445 = vmatprep.subr.bf16.mxu1 %v1753_v27 }
 0x31f   :  { %1446 = vmatpush3.bf16.msra.mxu1 %v1580_v23 }
 0x320   :  { %1447 = vmatprep.subr.bf16.mxu1 %v1753_v27 }
 0x323   :  { %1448 = vmatpush3.bf16.msra.mxu1 %v1581_v24 }
 0x324   :  { %1449 = vmatprep.subr.bf16.mxu1 %v1753_v27 }
 0x327   :  { %1450 = vmatpush3.bf16.msra.mxu1 %v1582_v25 }
 0x328   :  { %1475 = vmatprep.subr.bf16.mxu1 %v1753_v27 }
 0x3dd   :  { %v574_v3 = vpop.f32.mrb[4].mxu1 }
 0x3de   :  { %v575_v4 = vadd.f32 %v574_v3, %v491_v2  ;;  %v1413_v5 = vpop.f32.mrb[5].mxu1 }
 0x3df   :  { %v577_v6 = vpop.f32.mrb[6].mxu1 }
 0x3e0   :  { %v583_v7 = vmul.f32 0.70710677, %v575_v4  ;;  %v578_v8 = vadd.f32 %v577_v6, %v491_v2  ;;  %v1414_v9 = vpop.f32.mrb[7].mxu1  ;;  %v581_v14 = vmul.f32 0.5, %v575_v4 }
 0x3e2   :  { %1623 = verf.f32 %v583_v7  ;;  %v584_v10 = vmul.f32 0.70710677, %v578_v8  ;;  %v582_v15 = vmul.f32 0.5, %v578_v8 }
 0x3e4   :  { %1625 = verf.f32 %v584_v10  ;;  %v1593_v10 = vld [vmem:[#allocation5 + $0x720] ss:$8 sps:$4 sm:$0xff]  }
 0x3ec   :  { %v1624_v11 = vpop.eup %1623 }
 0x3ed   :  { %v587_v12 = vadd.f32 1.0, %v1624_v11  ;;  %v1594_v11 = vld [vmem:[#allocation5 + $0x730] ss:$8 sps:$4 sm:$0xff]  }
 0x3ee   :  { %v1626_v13 = vpop.eup %1625 }
 0x3ef   :  { %v588_v16 = vadd.f32 1.0, %v1626_v13  ;;  %v589_v17 = vmul.f32 %v587_v12, %v581_v14  ;;  %v1595_v12 = vld [vmem:[#allocation5 + $0x740] ss:$8 sps:$4 sm:$0xff]   ;;  %v1596_v13 = vld [vmem:[#allocation5 + $0x750] ss:$8 sps:$4 sm:$0xff]  }
 0x3f0   :  { %v1597_v14 = vld [vmem:[#allocation5 + $0x760] ss:$8 sps:$4 sm:$0xff]  }
 0x3f1   :  { %v590_v18 = vmul.f32 %v588_v16, %v582_v15  ;;  %v1598_v15 = vld [vmem:[#allocation5 + $0x770] ss:$8 sps:$4 sm:$0xff]   ;;  %v1599_v16 = vld [vmem:[#allocation5 + $0x800] ss:$8 sps:$4 sm:$0xff]  }
 0x3f3   :  { %v607_v19 = vpack.c.bf16 %v590_v18, %v589_v17  ;;  %v1600_v17 = vld [vmem:[#allocation5 + $0x810] ss:$8 sps:$4 sm:$0xff]   ;;  %v842_v18 = vld [vmem:[#allocation7 + $0x6] ss:$0 sm:$0xff] }
 0x3f5   :  { %1432 = vmatmul.mubr.bf16.vlgmr.msra.gmra.mrb[8].mxu0 %v607_v19 }
 0x3f6   :  { %1471 = vmatprep.mubr.msk.bf16.mxu0 %vm1754_vm1, %v1753_v27  ;;  %1456 = vmatpush3.bf16.msra.mxu0 %v1583_v26 }
 0x3f7   :  { %1457 = vmatprep.subr.bf16.mxu0 %v1753_v27 }
 0x3fa   :  { %1458 = vmatpush3.bf16.msra.mxu0 %v1584_v29 }
 0x3fb   :  { %1459 = vmatprep.subr.bf16.mxu0 %v1753_v27 }
 0x3fe   :  { %1460 = vmatpush3.bf16.msra.mxu0 %v1585_v48 }
 0x3ff   :  { %1461 = vmatprep.subr.bf16.mxu0 %v1753_v27 }
 0x402   :  { %1462 = vmatpush3.bf16.msra.mxu0 %v1586_v49 }
 0x403   :  { %1463 = vmatprep.subr.bf16.mxu0 %v1753_v27 }
 0x406   :  { %1464 = vmatpush3.bf16.msra.mxu0 %v1587_v50 }
 0x407   :  { %1465 = vmatprep.subr.bf16.mxu0 %v1753_v27 }
 0x40a   :  { %1466 = vmatpush3.bf16.msra.mxu0 %v1588_v51 }
 0x40b   :  { %1467 = vmatprep.subr.bf16.mxu0 %v1753_v27 }
 0x40e   :  { %1468 = vmatpush3.bf16.msra.mxu0 %v1589_v52 }
 0x40f   :  { %1469 = vmatprep.subr.bf16.mxu0 %v1753_v27 }
 0x412   :  { %1470 = vmatpush3.bf16.msra.mxu0 %v1590_v53 }
 0x413   :  { %1495 = vmatprep.subr.bf16.mxu0 %v1753_v27 }
 0x4c8   :  { %v691_v31 = vpop.f32.mrb[8].mxu0 }
 0x4c9   :  { %v692_v32 = vadd.f32 %v691_v31, %v608_v30  ;;  %v1433_v33 = vpop.f32.mrb[9].mxu0 }
 0x4ca   :  { %v694_v34 = vpop.f32.mrb[10].mxu0 }
 0x4cb   :  { %v700_v35 = vmul.f32 0.70710677, %v692_v32  ;;  %v695_v36 = vadd.f32 %v694_v34, %v608_v30  ;;  %v1434_v37 = vpop.f32.mrb[11].mxu0  ;;  %v698_v42 = vmul.f32 0.5, %v692_v32 }
 0x4cd   :  { %1627 = verf.f32 %v700_v35  ;;  %v701_v38 = vmul.f32 0.70710677, %v695_v36  ;;  %v699_v43 = vmul.f32 0.5, %v695_v36 }
 0x4cf   :  { %1629 = verf.f32 %v701_v38  ;;  %v1601_v38 = vld [vmem:[#allocation5 + $0x820] ss:$8 sps:$4 sm:$0xff]  }
 0x4d7   :  { %v1628_v39 = vpop.eup %1627 }
 0x4d8   :  { %v704_v40 = vadd.f32 1.0, %v1628_v39  ;;  %v1602_v39 = vld [vmem:[#allocation5 + $0x830] ss:$8 sps:$4 sm:$0xff]  }
 0x4d9   :  { %v1630_v41 = vpop.eup %1629 }
 0x4da   :  { %v705_v44 = vadd.f32 1.0, %v1630_v41  ;;  %v706_v45 = vmul.f32 %v704_v40, %v698_v42  ;;  %v1603_v40 = vld [vmem:[#allocation5 + $0x840] ss:$8 sps:$4 sm:$0xff]   ;;  %v1604_v41 = vld [vmem:[#allocation5 + $0x850] ss:$8 sps:$4 sm:$0xff]  }
 0x4db   :  { %v1605_v42 = vld [vmem:[#allocation5 + $0x860] ss:$8 sps:$4 sm:$0xff]  }
 0x4dc   :  { %v707_v46 = vmul.f32 %v705_v44, %v699_v43  ;;  %v1606_v43 = vld [vmem:[#allocation5 + $0x870] ss:$8 sps:$4 sm:$0xff]   ;;  %v959_v44 = vld [vmem:[#allocation7 + $0x7] ss:$0 sm:$0xff] }
 0x4de   :  { %v724_v47 = vpack.c.bf16 %v707_v46, %v706_v45 }
 0x4e0   :  { %1452 = vmatmul.mubr.bf16.vlgmr.msra.gmra.mrb[8].mxu1 %v724_v47 }
 0x4e1   :  { %1491 = vmatprep.mubr.msk.bf16.mxu1 %vm1754_vm1, %v1753_v27  ;;  %1476 = vmatpush3.bf16.msra.mxu1 %v1591_v54 }
 0x4e2   :  { %1477 = vmatprep.subr.bf16.mxu1 %v1753_v27 }
 0x4e5   :  { %1478 = vmatpush3.bf16.msra.mxu1 %v1592_v55 }
 0x4e6   :  { %1479 = vmatprep.subr.bf16.mxu1 %v1753_v27 }
 0x4e9   :  { %1480 = vmatpush3.bf16.msra.mxu1 %v1593_v10 }
 0x4ea   :  { %1481 = vmatprep.subr.bf16.mxu1 %v1753_v27 }
 0x4ed   :  { %1482 = vmatpush3.bf16.msra.mxu1 %v1594_v11 }
 0x4ee   :  { %1483 = vmatprep.subr.bf16.mxu1 %v1753_v27 }
 0x4f1   :  { %1484 = vmatpush3.bf16.msra.mxu1 %v1595_v12 }
 0x4f2   :  { %1485 = vmatprep.subr.bf16.mxu1 %v1753_v27 }
 0x4f5   :  { %1486 = vmatpush3.bf16.msra.mxu1 %v1596_v13 }
 0x4f6   :  { %1487 = vmatprep.subr.bf16.mxu1 %v1753_v27 }
 0x4f9   :  { %1488 = vmatpush3.bf16.msra.mxu1 %v1597_v14 }
 0x4fa   :  { %1489 = vmatprep.subr.bf16.mxu1 %v1753_v27 }
 0x4fd   :  { %1490 = vmatpush3.bf16.msra.mxu1 %v1598_v15 }
 0x5b3   :  { %v808_v57 = vpop.f32.mrb[8].mxu1 }
 0x5b4   :  { %v809_v58 = vadd.f32 %v808_v57, %v725_v56  ;;  %v1453_v59 = vpop.f32.mrb[9].mxu1 }
 0x5b5   :  { %v811_v60 = vpop.f32.mrb[10].mxu1 }
 0x5b6   :  { %v817_v61 = vmul.f32 0.70710677, %v809_v58  ;;  %v812_v62 = vadd.f32 %v811_v60, %v725_v56  ;;  %v1454_v63 = vpop.f32.mrb[11].mxu1  ;;  %v815_v4 = vmul.f32 0.5, %v809_v58 }
 0x5b8   :  { %1631 = verf.f32 %v817_v61  ;;  %v818_v0 = vmul.f32 0.70710677, %v812_v62  ;;  %v816_v5 = vmul.f32 0.5, %v812_v62  ;;  %v1167_v61 = vand.u32 127, %v68_v28  ;;  %v1076_v62 = vld [vmem:[#allocation7 + $0x10] ss:$0 sm:$0xff] }
 0x5ba   :  { %1633 = verf.f32 %v818_v0  ;;  %vm1168_vm2 = vcmp.lt.s32.totalorder %v1167_v61, 3 }
 0x5c2   :  { %v1632_v1 = vpop.eup %1631 }
 0x5c3   :  { %v821_v2 = vadd.f32 1.0, %v1632_v1 }
 0x5c4   :  { %v1634_v3 = vpop.eup %1633 }
 0x5c5   :  { %v822_v6 = vadd.f32 1.0, %v1634_v3  ;;  %v823_v7 = vmul.f32 %v821_v2, %v815_v4 }
 0x5c7   :  { %v824_v8 = vmul.f32 %v822_v6, %v816_v5 }
 0x5c9   :  { %v841_v9 = vpack.c.bf16 %v824_v8, %v823_v7 }
 0x5cb   :  { %1472 = vmatmul.mubr.bf16.vlgmr.msra.gmra.mrb[12].mxu0 %v841_v9 }
 0x5cc   :  { %1511 = vmatprep.mubr.msk.bf16.mxu0 %vm1754_vm1, %v1753_v27  ;;  %1496 = vmatpush3.bf16.msra.mxu0 %v1599_v16 }
 0x5cd   :  { %1497 = vmatprep.subr.bf16.mxu0 %v1753_v27 }
 0x5d0   :  { %1498 = vmatpush3.bf16.msra.mxu0 %v1600_v17 }
 0x5d1   :  { %1499 = vmatprep.subr.bf16.mxu0 %v1753_v27 }
 0x5d4   :  { %1500 = vmatpush3.bf16.msra.mxu0 %v1601_v38 }
 0x5d5   :  { %1501 = vmatprep.subr.bf16.mxu0 %v1753_v27 }
 0x5d8   :  { %1502 = vmatpush3.bf16.msra.mxu0 %v1602_v39 }
 0x5d9   :  { %1503 = vmatprep.subr.bf16.mxu0 %v1753_v27 }
 0x5dc   :  { %1504 = vmatpush3.bf16.msra.mxu0 %v1603_v40 }
 0x5dd   :  { %1505 = vmatprep.subr.bf16.mxu0 %v1753_v27 }
 0x5e0   :  { %1506 = vmatpush3.bf16.msra.mxu0 %v1604_v41 }
 0x5e1   :  { %1507 = vmatprep.subr.bf16.mxu0 %v1753_v27 }
 0x5e4   :  { %1508 = vmatpush3.bf16.msra.mxu0 %v1605_v42 }
 0x5e5   :  { %1509 = vmatprep.subr.bf16.mxu0 %v1753_v27 }
 0x5e8   :  { %1510 = vmatpush3.bf16.msra.mxu0 %v1606_v43 }
 0x69e   :  { %v925_v19 = vpop.f32.mrb[12].mxu0 }
 0x69f   :  { %v926_v20 = vadd.f32 %v925_v19, %v842_v18  ;;  %v1473_v21 = vpop.f32.mrb[13].mxu0 }
 0x6a0   :  { %v928_v22 = vpop.f32.mrb[14].mxu0 }
 0x6a1   :  { %v934_v23 = vmul.f32 0.70710677, %v926_v20  ;;  %v929_v24 = vadd.f32 %v928_v22, %v842_v18  ;;  %v1474_v25 = vpop.f32.mrb[15].mxu0  ;;  %v932_v32 = vmul.f32 0.5, %v926_v20 }
 0x6a3   :  { %1635 = verf.f32 %v934_v23  ;;  %v935_v26 = vmul.f32 0.70710677, %v929_v24  ;;  %v933_v33 = vmul.f32 0.5, %v929_v24 }
 0x6a5   :  { %1637 = verf.f32 %v935_v26 }
 0x6ad   :  { %v1636_v29 = vpop.eup %1635 }
 0x6ae   :  { %v938_v30 = vadd.f32 1.0, %v1636_v29 }
 0x6af   :  { %v1638_v31 = vpop.eup %1637 }
 0x6b0   :  { %v939_v34 = vadd.f32 1.0, %v1638_v31  ;;  %v940_v35 = vmul.f32 %v938_v30, %v932_v32 }
 0x6b2   :  { %v941_v36 = vmul.f32 %v939_v34, %v933_v33 }
 0x6b4   :  { %v958_v37 = vpack.c.bf16 %v941_v36, %v940_v35 }
 0x6b6   :  { %1492 = vmatmul.mubr.bf16.vlgmr.msra.gmra.mrb[12].mxu1 %v958_v37 }
 0x789   :  { %v1042_v45 = vpop.f32.mrb[12].mxu1 }
 0x78a   :  { %v1043_v46 = vadd.f32 %v1042_v45, %v959_v44  ;;  %v1493_v47 = vpop.f32.mrb[13].mxu1 }
 0x78b   :  { %v1045_v48 = vpop.f32.mrb[14].mxu1 }
 0x78c   :  { %v1051_v49 = vmul.f32 0.70710677, %v1043_v46  ;;  %v1046_v50 = vadd.f32 %v1045_v48, %v959_v44  ;;  %v1494_v51 = vpop.f32.mrb[15].mxu1  ;;  %v1049_v56 = vmul.f32 0.5, %v1043_v46 }
 0x78e   :  { %1639 = verf.f32 %v1051_v49  ;;  %v1052_v52 = vmul.f32 0.70710677, %v1046_v50  ;;  %v1050_v57 = vmul.f32 0.5, %v1046_v50 }
 0x790   :  { %1641 = verf.f32 %v1052_v52 }
 0x798   :  { %v1640_v53 = vpop.eup %1639 }
 0x799   :  { %v1055_v54 = vadd.f32 1.0, %v1640_v53 }
 0x79a   :  { %v1642_v55 = vpop.eup %1641 }
 0x79b   :  { %v1056_v58 = vadd.f32 1.0, %v1642_v55  ;;  %v1057_v27 = vmul.f32 %v1055_v54, %v1049_v56 }
 0x79d   :  { %v1058_v59 = vmul.f32 %v1056_v58, %v1050_v57 }
 0x79f   :  { %v1075_v60 = vpack.c.bf16 %v1058_v59, %v1057_v27 }
 0x7a1   :  { %1512 = vmatmul.mubr.bf16.vlgmr.msra.gmra.mrb[16].mxu0 %v1075_v60 }
 0x874   :  { %v1159_v63 = vpop.f32.mrb[16].mxu0 }
 0x875   :  { %v1160_v0 = vadd.f32 %v1159_v63, %v1076_v62  ;;  %v1513_v1 = vpop.f32.mrb[17].mxu0 }
 0x876   :  { %v1162_v2 = vpop.f32.mrb[18].mxu0 }
 0x877   :  { %v1163_v3 = vadd.f32 %v1162_v2, %v1076_v62  ;;  %v1514_v4 = vpop.f32.mrb[19].mxu0  ;;  %v1169_v5 = vsel %vm1168_vm2, %v1160_v0, -inf }
 0x878   :  { %1171 = vmax.xlane.f32.xlu0 %v1169_v5 }
 0x879   :  { %v1170_v6 = vsel %vm1168_vm2, %v1163_v3, -inf }
 0x87c   :  { %1173 = vmax.xlane.f32.xlu0 %v1170_v6 }
 0x905   :  { %v1172_v7 = vpop.xlane.xlu0 %1171 }
 0x906   :  { %v1175_v8 = vsub.f32 %v1160_v0, %v1172_v7 }
 0x908   :  { %v1177_v9 = vmul.f32 1.442695, %v1175_v8 }
 0x909   :  { %v1174_v10 = vpop.xlane.xlu0 %1173 }
 0x90a   :  { %1643 = vpow2.f32 %v1177_v9  ;;  %v1176_v28 = vsub.f32 %v1163_v3, %v1174_v10 }
 0x90c   :  { %v1179_v11 = vmul.f32 1.442695, %v1176_v28 }
 0x90e   :  { %1645 = vpow2.f32 %v1179_v11 }
 0x914   :  { %v1644_v12 = vpop.eup %1643 }
 0x915   :  { %v1181_v13 = vsel %vm1168_vm2, %v1644_v12, 0.0 }
 0x916   :  { %1183 = vadd.xlane.f32.xlu1 %v1181_v13 }
 0x918   :  { %v1646_v14 = vpop.eup %1645 }
 0x919   :  { %v1182_v15 = vsel %vm1168_vm2, %v1646_v14, 0.0 }
 0x91a   :  { %1185 = vadd.xlane.f32.xlu1 %v1182_v15 }
 0x9a3   :  { %v1184_v16 = vpop.xlane.xlu1 %1183 }
 0x9a4   :  { %1647 = vrcp.f32 %v1184_v16 }
 0x9a7   :  { %v1186_v17 = vpop.xlane.xlu1 %1185 }
 0x9a8   :  { %1649 = vrcp.f32 %v1186_v17 }
 0x9ae   :  { %v1648_v18 = vpop.eup %1647 }
 0x9af   :  { %v1189_v19 = vmul.f32 %v1648_v18, %v1181_v13 }
 0x9b1   :  { %1191 = vst [vmem:[#allocation8] sm:$0xff] %v1189_v19 }
 0x9b2   :  { %v1650_v20 = vpop.eup %1649 }
 0x9b3   :  { %v1190_v21 = vmul.f32 %v1650_v20, %v1182_v15 }
 0x9b5   :  { %1192 = vst [vmem:[#allocation8 + $0x8] sm:$0xff] %v1190_v21 }
 0x9b6   :  { %1728 = shalt.err (!%p1725_p0)
}
 0x9b7   :  { %s1729_s29 = scalar_lea.hbm %s1919_s3, 256 }
 0x9b8   :  { %p1730_p1 = scmp.ne.s32.totalorder %s1919_s3, %s1729_s29  ;;  %p1733_p2 = scmp.lt.u32.totalorder %s1729_s29, %s1919_s3 }
 0x9ba   :  { %p1735_p3 = pnand %p1733_p2, %p1730_p1 }
 0x9bc   :  { %1738 = shalt.err (!%p1735_p3)
}
 0x9bd   :  { %1204 = dma.vmem_to_hbm [thread:$0]  %s1199_s23, 256, %s1919_s3, [#allocation4], %s1747_s24, %s1747_s24, %s1748_s25  }
 0x9be   :  { %1743 = dma.done.wait [#allocation4], 256  }
 0x9bf   :  { %1744 = vsyncadd [#allocation4], 4294967040 }
 0x9c0   :  { %1208 = vsyncpa [#allocation3], 1 }
 0x9c1   :  { %1209 = vsyncpa [#allocation6], 1 }
 0x9c2   :  { %1210 = vsyncpa [#allocation4], 1 }

</bundles_post_ra>
